<compile_context>
chip_gen: v7x
topology: tpu7x:2x2x1
jax: 0.10.0
libtpu: 0.0.40
codegen_flags: <defaults>
</compile_context>

<pallas_src>
import functools

import jax
import jax.numpy as jnp
from jax.experimental import pallas as pl
from jax.experimental.pallas import tpu as pltpu


_LANE = 128
_MAX_LANE_GROUPS = 32                    # spatial tile <= 4096 lanes
_TILE_BYTES_TARGET = 8 * 1024 * 1024     # per input block (Pallas double-buffers it)
_VMEM_LIMIT_BYTES = 48 * 1024 * 1024     # explicit scoped-VMEM limit, < v7x physical


def _cdiv(a, b):
    return -(-a // b)


def _round_up(a, b):
    return _cdiv(a, b) * b


def _global_pool_kernel(x_ref, o_ref, acc_ref, *, pool, inv_s, s, ts, lane_groups):
    """grid = (row_tiles, spatial_tiles).  Spatial is the reduction axis (last,
    'arbitrary'); the output block and acc_ref stay resident across it."""
    j = pl.program_id(1)
    neutral = -jnp.inf if pool == 0 else 0.0

    @pl.when(j == 0)
    def _():
        acc_ref[...] = jnp.full_like(acc_ref, neutral)

    x = x_ref[...].astype(jnp.float32)

    if s % ts != 0:
        # The last spatial tile is a partial boundary block: its out-of-range
        # lanes hold undefined VMEM contents, so mask them with the neutral
        # element (-inf for max, 0 for sum).
        col = j * ts + jax.lax.broadcasted_iota(jnp.int32, x.shape, 1)
        x = jnp.where(col < s, x, neutral)

    # Element-wise (VPU) accumulation over 128-lane groups: no cross-lane
    # reduce and no narrow masked store in the steady state.
    partial = x[:, 0:_LANE]
    for g in range(1, lane_groups):
        chunk = x[:, g * _LANE:(g + 1) * _LANE]
        partial = jnp.maximum(partial, chunk) if pool == 0 else partial + chunk
    if pool == 0:
        acc_ref[...] = jnp.maximum(acc_ref[...], partial)
    else:
        acc_ref[...] = acc_ref[...] + partial

    @pl.when(j == pl.num_programs(1) - 1)
    def _():
        if pool == 0:
            o_ref[...] = jnp.max(acc_ref[...], axis=-1,
                                 keepdims=True).astype(o_ref.dtype)
        else:
            o_ref[...] = (jnp.sum(acc_ref[...], axis=-1, keepdims=True)
                          * inv_s).astype(o_ref.dtype)


def _select_tiles(rows, s, itemsize):
    """Pick (tr, ts): ts a multiple of 128 (<= 4096 lanes); tr a multiple of the
    packed sublane count, sized for ~8 MiB per block, dividing the padded row
    count, and giving >= 2 row tiles when rows allow (v7x megacore)."""
    sub = max(8, 32 // itemsize)          # 8 for f32, 16 for bf16, 32 for int8

    ts = min(_cdiv(s, _LANE), _MAX_LANE_GROUPS) * _LANE

    rows_pad = _round_up(rows, sub)
    cap = max(sub, (_TILE_BYTES_TARGET // (ts * itemsize)) // sub * sub)
    # Keep at least 2 row tiles when there is more than one sublane-group of
    # rows, so the 'parallel' axis can be sharded across both v7x TensorCores.
    if rows_pad > sub and cap >= rows_pad:
        cap = _round_up(_cdiv(rows_pad, 2), sub)
    tr = min(cap, rows_pad)
    # Make tr divide the sublane-padded row count (avoids partial row blocks in
    # the common case where rows is already a multiple of the sublane count).
    while rows_pad % tr != 0:
        tr -= sub
    return tr, ts


def global_pooling_block(x, size=1, pool=0):
    """Pallas equivalent of GlobalPoolingBlock(size=1, pool=...).forward(x).

    x: (N, C, D, H, W) -> (N, C, 1, 1, 1).
    pool == 0 -> global max pool, pool == 1 -> global average pool.
    """
    if size != 1:
        # TODO(synk): AdaptiveMax/AvgPool3d with output size > 1 (non-global
        # adaptive windows) is not implemented; size=1 (global pool) only.
        raise NotImplementedError("only size=1 (global pooling) supported")
    if pool not in (0, 1):
        # Mirror the PyTorch module's fallback behavior (trace-time only).
        print('pool={} != 0 or 1 --> pool=0'.format(pool))
        pool = 0

    n, c, d, h, w = x.shape
    rows = n * c
    s = d * h * w
    x2 = x.reshape(rows, s)

    itemsize = jnp.dtype(x.dtype).itemsize
    tr, ts = _select_tiles(rows, s, itemsize)
    n_row_tiles = _cdiv(rows, tr)
    n_sp_tiles = _cdiv(s, ts)

    kernel = functools.partial(
        _global_pool_kernel, pool=pool, inv_s=1.0 / float(s),
        s=s, ts=ts, lane_groups=ts // _LANE)

    out2 = pl.pallas_call(
        kernel,
        out_shape=jax.ShapeDtypeStruct((rows, 1), x.dtype),
        grid_spec=pltpu.PrefetchScalarGridSpec(
            num_scalar_prefetch=0,
            grid=(n_row_tiles, n_sp_tiles),
            in_specs=[pl.BlockSpec((tr, ts), lambda i, j: (i, j))],
            out_specs=pl.BlockSpec((tr, 1), lambda i, j: (i, 0)),
            scratch_shapes=[pltpu.VMEM((tr, _LANE), jnp.float32)],
        ),
        compiler_params=pltpu.CompilerParams(
            dimension_semantics=("parallel", "arbitrary"),
            vmem_limit_bytes=_VMEM_LIMIT_BYTES),
    )(x2)

    return out2.reshape(n, c, 1, 1, 1)


if __name__ == "__main__":
    key = jax.random.PRNGKey(0)
    # Small NCDHW input: batch=2, channels=4, spatial=8^3.
    x = jax.random.normal(key, (2, 4, 8, 8, 8), dtype=jnp.float32)

    # pool=0 : AdaptiveMaxPool3d(1)
    out_max = jax.block_until_ready(global_pooling_block(x, size=1, pool=0))
    ref_max = jnp.max(x, axis=(2, 3, 4), keepdims=True)
    assert out_max.shape == (2, 4, 1, 1, 1)
    assert jnp.allclose(out_max, ref_max, atol=1e-6, rtol=1e-6)

    # pool=1 : AdaptiveAvgPool3d(1)
    out_avg = jax.block_until_ready(global_pooling_block(x, size=1, pool=1))
    ref_avg = jnp.mean(x, axis=(2, 3, 4), keepdims=True)
    assert out_avg.shape == (2, 4, 1, 1, 1)
    assert jnp.allclose(out_avg, ref_avg, atol=1e-5, rtol=1e-5)

    # Ragged spatial extent (5*6*7 = 210): exercises the in-kernel tail mask,
    # no wrapper-side padding.
    x_r = jax.random.normal(jax.random.PRNGKey(1), (2, 4, 5, 6, 7),
                            dtype=jnp.float32)
    out_max_r = jax.block_until_ready(global_pooling_block(x_r, size=1, pool=0))
    assert jnp.allclose(out_max_r, jnp.max(x_r, axis=(2, 3, 4), keepdims=True),
                        atol=1e-6, rtol=1e-6)
    out_avg_r = jax.block_until_ready(global_pooling_block(x_r, size=1, pool=1))
    assert jnp.allclose(out_avg_r, jnp.mean(x_r, axis=(2, 3, 4), keepdims=True),
                        atol=1e-5, rtol=1e-5)

    print("KERNEL_OK")
</pallas_src>

<mosaic_0001>
module attributes {stable_mosaic.version = 11 : i64} {
  func.func @_global_pool_kernel(%arg0: i32, %arg1: i32, %arg2: memref<8x512xf32, #tpu.memory_space<vmem>>, %arg3: memref<8x1xf32, #tpu.memory_space<vmem>>, %arg4: memref<8x128xf32, #tpu.memory_space<vmem>>) attributes {dimension_semantics = [#tpu.dimension_semantics<parallel>, #tpu.dimension_semantics<arbitrary>], iteration_bounds = array<i64: 1, 1>, scalar_prefetch = 0 : i64, scratch_operands = 1 : i64, tpu.core_type = #tpu.core_type<tc>, window_params = [{transform_indices = @transform_0, window_bounds = array<i64: 8, 512>}, {transform_indices = @transform_1, window_bounds = array<i64: 8, 1>}]} {
    %c0_i32 = arith.constant 0 : i32
    %0 = arith.cmpi eq, %arg1, %c0_i32 : i32
    %1 = arith.extui %0 : i1 to i32
    %c0_i32_0 = arith.constant 0 : i32
    %2 = arith.cmpi ne, %1, %c0_i32_0 : i32
    scf.if %2 {
      %cst = arith.constant 0xFF800000 : f32
      %17 = vector.broadcast %cst : f32 to vector<8x128xf32>
      %c0_8 = arith.constant 0 : index
      %c0_9 = arith.constant 0 : index
      %18 = vector.load %arg4[%c0_8, %c0_9] : memref<8x128xf32, #tpu.memory_space<vmem>>, vector<8x128xf32>
      tpu.vector_store %arg4[%c0_8, %c0_9], %17 {strides = array<i32>} : memref<8x128xf32, #tpu.memory_space<vmem>>, vector<8x128xf32>,
    } else {
    }
    %c0 = arith.constant 0 : index
    %c0_1 = arith.constant 0 : index
    %3 = vector.load %arg2[%c0, %c0_1] : memref<8x512xf32, #tpu.memory_space<vmem>>, vector<8x512xf32>
    %4 = vector.extract_strided_slice %3 {offsets = [0, 0], sizes = [8, 128], strides = [1, 1]} : vector<8x512xf32> to vector<8x128xf32>
    %5 = vector.extract_strided_slice %3 {offsets = [0, 128], sizes = [8, 128], strides = [1, 1]} : vector<8x512xf32> to vector<8x128xf32>
    %6 = arith.maximumf %4, %5 : vector<8x128xf32>
    %7 = vector.extract_strided_slice %3 {offsets = [0, 256], sizes = [8, 128], strides = [1, 1]} : vector<8x512xf32> to vector<8x128xf32>
    %8 = arith.maximumf %6, %7 : vector<8x128xf32>
    %9 = vector.extract_strided_slice %3 {offsets = [0, 384], sizes = [8, 128], strides = [1, 1]} : vector<8x512xf32> to vector<8x128xf32>
    %10 = arith.maximumf %8, %9 : vector<8x128xf32>
    %c0_2 = arith.constant 0 : index
    %c0_3 = arith.constant 0 : index
    %11 = vector.load %arg4[%c0_2, %c0_3] : memref<8x128xf32, #tpu.memory_space<vmem>>, vector<8x128xf32>
    %12 = arith.maximumf %11, %10 : vector<8x128xf32>
    %c0_4 = arith.constant 0 : index
    %c0_5 = arith.constant 0 : index
    %13 = vector.load %arg4[%c0_4, %c0_5] : memref<8x128xf32, #tpu.memory_space<vmem>>, vector<8x128xf32>
    tpu.vector_store %arg4[%c0_4, %c0_5], %12 {strides = array<i32>} : memref<8x128xf32, #tpu.memory_space<vmem>>, vector<8x128xf32>,
    %c0_i32_6 = arith.constant 0 : i32
    %14 = arith.cmpi eq, %arg1, %c0_i32_6 : i32
    %15 = arith.extui %14 : i1 to i32
    %c0_i32_7 = arith.constant 0 : i32
    %16 = arith.cmpi ne, %15, %c0_i32_7 : i32
    scf.if %16 {
      %c0_8 = arith.constant 0 : index
      %c0_9 = arith.constant 0 : index
      %17 = vector.load %arg4[%c0_8, %c0_9] : memref<8x128xf32, #tpu.memory_space<vmem>>, vector<8x128xf32>
      %cst = arith.constant dense<0xFF800000> : vector<8xf32>
      %18 = vector.multi_reduction <maximumf>, %17, %cst [1] : vector<8x128xf32> to vector<8xf32>
      %19 = vector.shape_cast %18 : vector<8xf32> to vector<8x1xf32>
      %c0_10 = arith.constant 0 : index
      %c0_11 = arith.constant 0 : index
      %20 = vector.load %arg3[%c0_10, %c0_11] : memref<8x1xf32, #tpu.memory_space<vmem>>, vector<8x1xf32>
      tpu.vector_store %arg3[%c0_10, %c0_11], %19 {strides = array<i32>} : memref<8x1xf32, #tpu.memory_space<vmem>>, vector<8x1xf32>,
    } else {
    }
    return
  }
  func.func @transform_0(%arg0: i32, %arg1: i32) -> (i32, i32) {
    %c0_i32 = arith.constant 0 : i32
    return %arg0, %arg1 : i32, i32
  }
  func.func @transform_1(%arg0: i32, %arg1: i32) -> (i32, i32) {
    %c0_i32 = arith.constant 0 : i32
    %c0_i32_0 = arith.constant 0 : i32
    return %arg0, %c0_i32 : i32, i32
  }
}

</mosaic_0001>

<bundles_post_ra>
// kernel: tpu_custom_call.1
= control target key start
LH: loop header
LB: loop body
LE: loop exit
PB: predicated region body
PF: predicated region fallthrough
CT: control target
= control target key end

     0   :  { %6 = vsyncpa [#allocation4], 0  ;;  %s73_s6 = smov [#allocation3]   ;;  %s99_s0 = inlined_call_operand.hbm [shape: f32[8,512], index: 0, kind: input, shape index: {}]   ;;  %s100_s1 = inlined_call_operand.vmem [shape: f32[8,1], index: 1, kind: output, shape index: {}]  }
   0x1   :  { %s13_s7 = sshll.u32 %s73_s6, 4  ;;  %s49_s10 = scalar_lea.hbm %s99_s0, 512  ;;  %s14_s7 = int_to_ptr.vmem [resolvable:$true] %s13_s7 }
   0x2   :  { %p50_p0 = scmp.ne.s32.totalorder %s99_s0, %s49_s10  ;;  %p53_p1 = scmp.lt.u32.totalorder %s49_s10, %s99_s0 }
   0x4   :  { %p55_p2 = pnand %p53_p1, %p50_p0 }
   0x6   :  { %58 = shalt.err (!%p55_p2)
}
   0x7   :  { %s59_s15 = scalar_lea.vmem %s14_s7, 512  ;;  %p64_p4 = scmp.lt.s32.totalorder %s14_s7, %s14_s7 }
   0x8   :  { %p60_p3 = scmp.ne.s32.totalorder %s14_s7, %s59_s15  ;;  %p65_p5 = scmp.lt.s32.totalorder %s59_s15, %s59_s15 }
   0xa   :  { %p66_p6 = por %p65_p5, %p64_p4 }
   0xc   :  { %p67_p7 = pnand %p66_p6, %p60_p3 }
   0xe   :  { %70 = shalt.err (!%p67_p7)
}
   0xf   :  { %16 = dma.hbm_to_vmem [thread:$0]  %s99_s0, 512, %s14_s7, [#allocation4]  }
  0x10   :  { %71 = dma.done.wait [#allocation4], 512  }
  0x11   :  { %72 = vsyncadd [#allocation4], 4294966784  ;;  %v25_v0 = vld [vmem:[#allocation3] sm:$0xff]  ;;  %v26_v1 = vld [vmem:[#allocation3 + $0x8] sm:$0xff]  ;;  %vm41_vm0 = vcmask 7168  }
  0x12   :  { %v27_v2 = vld [vmem:[#allocation3 + $0x10] sm:$0xff]  ;;  %v29_v3 = vmax.f32 %v25_v0, %v26_v1  ;;  %v28_v4 = vld [vmem:[#allocation3 + $0x18] sm:$0xff] }
  0x14   :  { %v30_v5 = vmax.f32 %v29_v3, %v27_v2 }
  0x16   :  { %v31_v6 = vmax.f32 %v30_v5, %v28_v4 }
  0x18   :  { %39 = vmax.xlane.f32.xlu0 %v31_v6 }
  0xa5   :  { %v40_v7 = vpop.xlane.xlu0 %39 }
  0xa6   :  { %42 = vst.msk [vmem:[%s100_s1] sm:$0xff] %vm41_vm0, %v40_v7 }
  0xa7   :  { %47 = vsyncpa [#allocation4], 1 }

</bundles_post_ra>
